<compile_context>
chip_gen: v5e
topology: v5e:2x2
jax: 0.10.0
libtpu: 0.0.40
codegen_flags: <defaults>
</compile_context>

<pallas_src>
import functools

import jax
import jax.numpy as jnp
from jax.experimental import pallas as pl
from jax.experimental.pallas import tpu as pltpu

# RGB -> YCbCr matrix (rows = output channels Y, Cb, Cr), matching
# torch.tensor([[...]]).transpose(0,1) used as `rgb @ transform`.
_M = ((0.299, 0.587, 0.114),
      (-0.1687, -0.3313, 0.5),
      (0.5, -0.4187, -0.0813))
_BIAS = (0.0, 0.5, 0.5)

_LANE = 128
# Max sublane rows (bn * tr) per grid step per input block:
# 3 * 1024 * 128 * 4 B = 1.5 MiB / block / input -> 6 MiB double-buffered for
# two inputs. Fits v5e's 16 MiB scoped default and v7x's 32 MiB default.
_MAX_ROWS = 1024


def _color_sse_kernel(x_ref, t_ref, out_ref, *, tr, r_total, masked_tail):
    """(bn, 3, tr, 128) blocks of input/target -> (1, 1, 3, 128) partial SSE.

    The RGB->YCbCr transform is affine, so it commutes with the difference and
    the bias cancels exactly: Y(x) - Y(t) = M @ (x - t). We therefore form the
    RGB differences once and apply the 3x3 matrix only to the difference.
    """

    def emit(mask_rows):
        d = x_ref[...].astype(jnp.float32) - t_ref[...].astype(jnp.float32)
        dr = d[:, 0]                      # (bn, tr, 128)
        dg = d[:, 1]
        db = d[:, 2]
        if mask_rows:
            # Last row-block may read past the end of the array; zero those
            # rows (select, not multiply, so garbage NaN/Inf is discarded).
            row = (jax.lax.broadcasted_iota(jnp.int32, dr.shape, 1)
                   + pl.program_id(1) * tr)
            valid = row < r_total
            zero = jnp.zeros_like(dr)
            dr = jnp.where(valid, dr, zero)
            dg = jnp.where(valid, dg, zero)
            db = jnp.where(valid, db, zero)

        # TODO(synk): this per-channel quadratic (MSE) body is where a different
        # single-channel lossclass (e.g. WatsonDistanceFft) would go; the
        # difference-first simplification above is only exact for quadratic losses.
        for c in range(3):
            m0, m1, m2 = _M[c]
            dc = m0 * dr + m1 * dg + m2 * db
            ssq = jnp.sum(jnp.sum(dc * dc, axis=0), axis=0, keepdims=True)  # (1, 128)
            out_ref[0, 0, c:c + 1, :] = ssq

    if masked_tail:
        # Rare fallback: only the last row-block can read out of bounds, so only
        # it pays for the mask; every other grid cell runs the mask-free path.
        is_last = pl.program_id(1) == pl.num_programs(1) - 1

        @pl.when(is_last)
        def _():
            emit(True)

        @pl.when(jnp.logical_not(is_last))
        def _():
            emit(False)
    else:
        emit(False)


def _largest_divisor_leq(n, cap):
    """Largest divisor of n that is <= cap (at least 1). Trace-time only."""
    cap = max(1, min(cap, n))
    for d in range(cap, 0, -1):
        if n % d == 0:
            return d
    return 1


def _pick_tiles(n, r):
    """Choose (bn, tr, masked_tail) for an (n, 3, r, 128) layout.

    Invariants: bn divides n; tr is a multiple of 8 or equals r; masked_tail is
    True only when r > _MAX_ROWS has no clean divisor (last block gated in-kernel).
    Also tries to give the grid >= 2 cells so both v7x TensorCores get work.
    """
    masked_tail = False
    if r <= _MAX_ROWS:
        tr = r
        bn = _largest_divisor_leq(n, _MAX_ROWS // max(r, 1))
    else:
        bn = 1
        tr = None
        t = _MAX_ROWS
        while t >= _MAX_ROWS // 4:        # don't accept blocks < 384 KiB
            if r % t == 0:
                tr = t
                break
            t -= 8
        if tr is None:
            tr = _MAX_ROWS
            masked_tail = True

    nb = n // bn
    rb = -(-r // tr)
    if nb * rb == 1:
        # Single-cell grid would leave one v7x TensorCore idle; split if we can.
        if n >= 2:
            bn = _largest_divisor_leq(n, n // 2)
        elif r >= 16 and r % 16 == 0:
            tr = r // 2
    return bn, tr, masked_tail


@jax.jit
def color_wrapper_loss(x, t, w_tild):
    """Pallas implementation of ColorWrapper(MSE).forward(x, t)."""
    n, c, h, w = x.shape
    assert c == 3, "ColorWrapper expects RGB (C == 3) inputs"
    count = n * h * w  # elements per single-channel (N,1,H,W) slab

    hw = h * w
    hw_pad = -(-hw // _LANE) * _LANE
    xf = x.reshape(n, 3, hw)
    tf = t.reshape(n, 3, hw)
    if hw_pad != hw:
        # TODO(synk): rare ragged-lane fallback (H*W not a multiple of 128);
        # an in-kernel lane mask on the tail block would avoid this extra HBM
        # copy of both tensors. Zero padding contributes exactly 0 to the SSE.
        pad = ((0, 0), (0, 0), (0, hw_pad - hw))
        xf = jnp.pad(xf, pad)
        tf = jnp.pad(tf, pad)

    r = hw_pad // _LANE                    # sublane rows per (image, channel)
    bn, tr, masked_tail = _pick_tiles(n, r)
    nb = n // bn
    rb = -(-r // tr)

    x4 = xf.reshape(n, 3, r, _LANE)
    t4 = tf.reshape(n, 3, r, _LANE)

    kernel = functools.partial(_color_sse_kernel, tr=tr, r_total=r,
                               masked_tail=masked_tail)

    itemsize = jnp.dtype(x4.dtype).itemsize
    cost = pl.CostEstimate(
        # per pixel: 3 subs + 3 channels x (5 transform + 1 square + 1 acc) ~ 24
        flops=8 * x.size,
        transcendentals=0,
        bytes_accessed=2 * x4.size * itemsize + nb * rb * 3 * _LANE * 4,
    )

    partials = pl.pallas_call(
        kernel,
        out_shape=jax.ShapeDtypeStruct((nb, rb, 3, _LANE), jnp.float32),
        grid=(nb, rb),
        in_specs=[
            pl.BlockSpec((bn, 3, tr, _LANE), lambda i, j: (i, 0, j, 0)),
            pl.BlockSpec((bn, 3, tr, _LANE), lambda i, j: (i, 0, j, 0)),
        ],
        out_specs=pl.BlockSpec((1, 1, 3, _LANE), lambda i, j: (i, j, 0, 0)),
        compiler_params=pltpu.CompilerParams(
            dimension_semantics=("parallel", "parallel"),
            vmem_limit_bytes=32 * 1024 * 1024),
        cost_estimate=cost,
    )(x4, t4)

    # Tiny epilogue (nb*rb*3*128 floats): finish the reduction, per-channel mean,
    # and the softmax-weighted combine of the three channel losses.
    sse = jnp.sum(partials, axis=(0, 1, 3))          # (3,)
    per_channel = sse / jnp.float32(count)
    wts = jax.nn.softmax(w_tild.astype(jnp.float32))
    return jnp.sum(wts * per_channel)


def _reference_loss(x, t, w_tild):
    """Plain-JAX reference mirroring the PyTorch forward."""
    m = jnp.array(_M, dtype=jnp.float32)
    b = jnp.array(_BIAS, dtype=jnp.float32)

    def to_ycbcr(v):
        return jnp.einsum('nchw,oc->nohw', v.astype(jnp.float32), m) \
            + b[None, :, None, None]

    yx = to_ycbcr(x)
    yt = to_ycbcr(t)
    per_channel = jnp.mean((yx - yt) ** 2, axis=(0, 2, 3))  # (3,)
    wts = jax.nn.softmax(w_tild.astype(jnp.float32))
    return jnp.sum(wts * per_channel)


if __name__ == "__main__":
    key = jax.random.PRNGKey(0)
    kx, kt = jax.random.split(key)

    N, C, H, W = 2, 3, 16, 16  # NCHW, RGB
    x = jax.random.uniform(kx, (N, C, H, W), dtype=jnp.float32)
    t = jax.random.uniform(kt, (N, C, H, W), dtype=jnp.float32)

    # Deterministic parameter init, as in ColorWrapper.__init__ (trainable=False).
    w_tild = jnp.zeros((3,), dtype=jnp.float32)

    got = color_wrapper_loss(x, t, w_tild)
    got = jax.block_until_ready(got)

    want = _reference_loss(x, t, w_tild)
    assert jnp.allclose(got, want, rtol=1e-5, atol=1e-6), (got, want)

    print("KERNEL_OK")
</pallas_src>

<mosaic_0001>
module attributes {stable_mosaic.version = 11 : i64} {
  func.func @_color_sse_kernel(%arg0: i32, %arg1: i32, %arg2: memref<1x3x2x128xf32, #tpu.memory_space<vmem>>, %arg3: memref<1x3x2x128xf32, #tpu.memory_space<vmem>>, %arg4: memref<1x1x3x128xf32, #tpu.memory_space<vmem>>) attributes {dimension_semantics = [#tpu.dimension_semantics<parallel>, #tpu.dimension_semantics<parallel>], iteration_bounds = array<i64: 2, 1>, scalar_prefetch = 0 : i64, scratch_operands = 0 : i64, tpu.core_type = #tpu.core_type<tc>, window_params = [{transform_indices = @transform_0, window_bounds = array<i64: 1, 3, 2, 128>}, {transform_indices = @transform_1, window_bounds = array<i64: 1, 3, 2, 128>}, {transform_indices = @transform_2, window_bounds = array<i64: 1, 1, 3, 128>}]} {
    %c0 = arith.constant 0 : index
    %c0_0 = arith.constant 0 : index
    %c0_1 = arith.constant 0 : index
    %c0_2 = arith.constant 0 : index
    %0 = vector.load %arg2[%c0, %c0_0, %c0_1, %c0_2] : memref<1x3x2x128xf32, #tpu.memory_space<vmem>>, vector<1x3x2x128xf32>
    %c0_3 = arith.constant 0 : index
    %c0_4 = arith.constant 0 : index
    %c0_5 = arith.constant 0 : index
    %c0_6 = arith.constant 0 : index
    %1 = vector.load %arg3[%c0_3, %c0_4, %c0_5, %c0_6] : memref<1x3x2x128xf32, #tpu.memory_space<vmem>>, vector<1x3x2x128xf32>
    %2 = arith.subf %0, %1 : vector<1x3x2x128xf32>
    %3 = vector.extract_strided_slice %2 {offsets = [0, 0, 0, 0], sizes = [1, 1, 2, 128], strides = [1, 1, 1, 1]} : vector<1x3x2x128xf32> to vector<1x1x2x128xf32>
    %4 = vector.shape_cast %3 : vector<1x1x2x128xf32> to vector<1x2x128xf32>
    %5 = vector.extract_strided_slice %2 {offsets = [0, 1, 0, 0], sizes = [1, 1, 2, 128], strides = [1, 1, 1, 1]} : vector<1x3x2x128xf32> to vector<1x1x2x128xf32>
    %6 = vector.shape_cast %5 : vector<1x1x2x128xf32> to vector<1x2x128xf32>
    %7 = vector.extract_strided_slice %2 {offsets = [0, 2, 0, 0], sizes = [1, 1, 2, 128], strides = [1, 1, 1, 1]} : vector<1x3x2x128xf32> to vector<1x1x2x128xf32>
    %8 = vector.shape_cast %7 : vector<1x1x2x128xf32> to vector<1x2x128xf32>
    %cst = arith.constant 2.990000e-01 : f32
    %9 = vector.broadcast %cst : f32 to vector<1x2x128xf32>
    %10 = arith.mulf %9, %4 : vector<1x2x128xf32>
    %cst_7 = arith.constant 5.870000e-01 : f32
    %11 = vector.broadcast %cst_7 : f32 to vector<1x2x128xf32>
    %12 = arith.mulf %11, %6 : vector<1x2x128xf32>
    %13 = arith.addf %10, %12 : vector<1x2x128xf32>
    %cst_8 = arith.constant 1.140000e-01 : f32
    %14 = vector.broadcast %cst_8 : f32 to vector<1x2x128xf32>
    %15 = arith.mulf %14, %8 : vector<1x2x128xf32>
    %16 = arith.addf %13, %15 : vector<1x2x128xf32>
    %17 = arith.mulf %16, %16 : vector<1x2x128xf32>
    %cst_9 = arith.constant dense<0.000000e+00> : vector<2x128xf32>
    %18 = vector.multi_reduction <add>, %17, %cst_9 [0] : vector<1x2x128xf32> to vector<2x128xf32>
    %cst_10 = arith.constant dense<0.000000e+00> : vector<128xf32>
    %19 = vector.multi_reduction <add>, %18, %cst_10 [0] : vector<2x128xf32> to vector<128xf32>
    %20 = vector.shape_cast %19 : vector<128xf32> to vector<1x128xf32>
    %c0_11 = arith.constant 0 : index
    %c0_12 = arith.constant 0 : index
    %c0_13 = arith.constant 0 : index
    %c0_14 = arith.constant 0 : index
    %21 = vector.load %arg4[%c0_11, %c0_12, %c0_13, %c0_14] : memref<1x1x3x128xf32, #tpu.memory_space<vmem>>, vector<1x1x1x128xf32>
    %22 = vector.shape_cast %21 : vector<1x1x1x128xf32> to vector<1x128xf32>
    %23 = vector.shape_cast %20 : vector<1x128xf32> to vector<1x1x1x128xf32>
    tpu.vector_store %arg4[%c0_11, %c0_12, %c0_13, %c0_14], %23 {strides = array<i32>} : memref<1x1x3x128xf32, #tpu.memory_space<vmem>>, vector<1x1x1x128xf32>,
    %cst_15 = arith.constant -1.687000e-01 : f32
    %24 = vector.broadcast %cst_15 : f32 to vector<1x2x128xf32>
    %25 = arith.mulf %24, %4 : vector<1x2x128xf32>
    %cst_16 = arith.constant -3.313000e-01 : f32
    %26 = vector.broadcast %cst_16 : f32 to vector<1x2x128xf32>
    %27 = arith.mulf %26, %6 : vector<1x2x128xf32>
    %28 = arith.addf %25, %27 : vector<1x2x128xf32>
    %cst_17 = arith.constant 5.000000e-01 : f32
    %29 = vector.broadcast %cst_17 : f32 to vector<1x2x128xf32>
    %30 = arith.mulf %29, %8 : vector<1x2x128xf32>
    %31 = arith.addf %28, %30 : vector<1x2x128xf32>
    %32 = arith.mulf %31, %31 : vector<1x2x128xf32>
    %cst_18 = arith.constant dense<0.000000e+00> : vector<2x128xf32>
    %33 = vector.multi_reduction <add>, %32, %cst_18 [0] : vector<1x2x128xf32> to vector<2x128xf32>
    %cst_19 = arith.constant dense<0.000000e+00> : vector<128xf32>
    %34 = vector.multi_reduction <add>, %33, %cst_19 [0] : vector<2x128xf32> to vector<128xf32>
    %35 = vector.shape_cast %34 : vector<128xf32> to vector<1x128xf32>
    %c0_20 = arith.constant 0 : index
    %c0_21 = arith.constant 0 : index
    %c1 = arith.constant 1 : index
    %c0_22 = arith.constant 0 : index
    %36 = vector.load %arg4[%c0_20, %c0_21, %c1, %c0_22] : memref<1x1x3x128xf32, #tpu.memory_space<vmem>>, vector<1x1x1x128xf32>
    %37 = vector.shape_cast %36 : vector<1x1x1x128xf32> to vector<1x128xf32>
    %38 = vector.shape_cast %35 : vector<1x128xf32> to vector<1x1x1x128xf32>
    tpu.vector_store %arg4[%c0_20, %c0_21, %c1, %c0_22], %38 {strides = array<i32>} : memref<1x1x3x128xf32, #tpu.memory_space<vmem>>, vector<1x1x1x128xf32>,
    %cst_23 = arith.constant 5.000000e-01 : f32
    %39 = vector.broadcast %cst_23 : f32 to vector<1x2x128xf32>
    %40 = arith.mulf %39, %4 : vector<1x2x128xf32>
    %cst_24 = arith.constant -4.187000e-01 : f32
    %41 = vector.broadcast %cst_24 : f32 to vector<1x2x128xf32>
    %42 = arith.mulf %41, %6 : vector<1x2x128xf32>
    %43 = arith.addf %40, %42 : vector<1x2x128xf32>
    %cst_25 = arith.constant -0.0812999978 : f32
    %44 = vector.broadcast %cst_25 : f32 to vector<1x2x128xf32>
    %45 = arith.mulf %44, %8 : vector<1x2x128xf32>
    %46 = arith.addf %43, %45 : vector<1x2x128xf32>
    %47 = arith.mulf %46, %46 : vector<1x2x128xf32>
    %cst_26 = arith.constant dense<0.000000e+00> : vector<2x128xf32>
    %48 = vector.multi_reduction <add>, %47, %cst_26 [0] : vector<1x2x128xf32> to vector<2x128xf32>
    %cst_27 = arith.constant dense<0.000000e+00> : vector<128xf32>
    %49 = vector.multi_reduction <add>, %48, %cst_27 [0] : vector<2x128xf32> to vector<128xf32>
    %50 = vector.shape_cast %49 : vector<128xf32> to vector<1x128xf32>
    %c0_28 = arith.constant 0 : index
    %c0_29 = arith.constant 0 : index
    %c2 = arith.constant 2 : index
    %c0_30 = arith.constant 0 : index
    %51 = vector.load %arg4[%c0_28, %c0_29, %c2, %c0_30] : memref<1x1x3x128xf32, #tpu.memory_space<vmem>>, vector<1x1x1x128xf32>
    %52 = vector.shape_cast %51 : vector<1x1x1x128xf32> to vector<1x128xf32>
    %53 = vector.shape_cast %50 : vector<1x128xf32> to vector<1x1x1x128xf32>
    tpu.vector_store %arg4[%c0_28, %c0_29, %c2, %c0_30], %53 {strides = array<i32>} : memref<1x1x3x128xf32, #tpu.memory_space<vmem>>, vector<1x1x1x128xf32>,
    return
  }
  func.func @transform_0(%arg0: i32, %arg1: i32) -> (i32, i32, i32, i32) {
    %c0_i32 = arith.constant 0 : i32
    %c0_i32_0 = arith.constant 0 : i32
    %c0_i32_1 = arith.constant 0 : i32
    return %arg0, %c0_i32, %arg1, %c0_i32_0 : i32, i32, i32, i32
  }
  func.func @transform_1(%arg0: i32, %arg1: i32) -> (i32, i32, i32, i32) {
    %c0_i32 = arith.constant 0 : i32
    %c0_i32_0 = arith.constant 0 : i32
    %c0_i32_1 = arith.constant 0 : i32
    return %arg0, %c0_i32, %arg1, %c0_i32_0 : i32, i32, i32, i32
  }
  func.func @transform_2(%arg0: i32, %arg1: i32) -> (i32, i32, i32, i32) {
    %c0_i32 = arith.constant 0 : i32
    %c0_i32_0 = arith.constant 0 : i32
    %c0_i32_1 = arith.constant 0 : i32
    return %arg0, %arg1, %c0_i32, %c0_i32_0 : i32, i32, i32, i32
  }
}

</mosaic_0001>

<bundles_post_ra>
// kernel: color_wrapper_loss.1
= control target key start
LH: loop header
LB: loop body
LE: loop exit
PB: predicated region body
PF: predicated region fallthrough
CT: control target
= control target key end

     0   :  { %s428_s9 = smov 0   ;;  %s430_s10 = smov 0   ;;  %s468_s0 = inlined_call_operand.vmem [shape: f32[2,3,2,128], index: 0, kind: input, shape index: {}]   ;;  %s469_s1 = inlined_call_operand.vmem [shape: f32[2,3,2,128], index: 1, kind: input, shape index: {}]   ;;  %s470_s2 = inlined_call_operand.vmem [shape: f32[2,1,3,128], index: 2, kind: output, shape index: {}]  }
   0x1   :  { %s432_s11 = smov 0  }
   0x2 LB: > { %s24_s12 = sadd.s32 1, %s407_s10  ;;  %p358_p0 = scmp.ge.s32.totalorder %s411_s11, 1  ;;  %s411_s11 = sphi %s432_s11, %s12_s11   ;;  %s407_s10 = sphi %s430_s10, %s472_s10   ;;  %s403_s9 = sphi %s428_s9, %s471_s9  }
   0x3   : > { %p26_p1 = scmp.ge.s32.totalorder %s24_s12, 2  ;;  %p146_p2 = scmp.lt.s32.totalorder %s411_s11, 3 }
   0x5   : > { %s474_s12 = smov (%p26_p1, %s24_s12), 0  ;;  %p147_p3 = pnand %p358_p0, %p146_p2 }
   0x6   : > { %p181_p4 = scmp.lt.s32.totalorder (!%p147_p3), %s403_s9, 1 }
   0x7   : > { %150 = sbr.rel (%p147_p3) target bundleno = 44 (0x2c), region = 28 }
   0xc   : > { %s476_s9 = smov (!%p181_p4, %s403_s9), 1  ;;  %vm220_vm0 = vcmask 1041408  }
   0xd   : > { %s364_s13 = smul.u32 6, %s476_s9  ;;  %s361_s20 = sshll.u32 %s476_s9, 2 }
   0xe   : > { %s203_s23 = scalar_lea.vmem %s470_s2, %s361_s20 }
   0xf   : > { %s188_s16 = scalar_lea.vmem %s468_s0, %s364_s13  ;;  %s196_s19 = scalar_lea.vmem %s469_s1, %s364_s13 }
  0x10   : > { %v204_v0 = vld [vmem:[%s188_s16] sm:$0x3]  ;;  %v205_v1 = vld [vmem:[%s188_s16 + $0x2] sm:$0x3]  ;;  %v206_v2 = vld [vmem:[%s188_s16 + $0x4] sm:$0x3] }
  0x11   : > { %v207_v3 = vld [vmem:[%s196_s19] sm:$0x3]  ;;  %v208_v4 = vld [vmem:[%s196_s19 + $0x2] sm:$0x3]  ;;  %v209_v5 = vld [vmem:[%s196_s19 + $0x4] sm:$0x3] }
  0x12   : > { %v210_v6 = vsub.f32 %v204_v0, %v207_v3  ;;  %v211_v7 = vsub.f32 %v205_v1, %v208_v4  ;;  %v212_v8 = vsub.f32 %v206_v2, %v209_v5 }
  0x14   : > { %v213_v9 = vmul.f32 0.299, %v210_v6  ;;  %v214_v10 = vmul.f32 0.587, %v211_v7  ;;  %v216_v11 = vmul.f32 0.114, %v212_v8 }
  0x15   : > { %v229_v12 = vmul.f32 -0.1687, %v210_v6  ;;  %v230_v13 = vmul.f32 -0.3313, %v211_v7  ;;  %v232_v14 = vmul.f32 0.5, %v212_v8  ;;  %v244_v15 = vmul.f32 0.5, %v210_v6 }
  0x16   : > { %v215_v16 = vadd.f32 %v214_v10, %v213_v9  ;;  %v245_v17 = vmul.f32 -0.4187, %v211_v7  ;;  %v247_v18 = vmul.f32 -0.0813, %v212_v8 }
  0x17   : > { %v231_v19 = vadd.f32 %v230_v13, %v229_v12 }
  0x18   : > { %v217_v20 = vadd.f32 %v216_v11, %v215_v16  ;;  %v246_v21 = vadd.f32 %v245_v17, %v244_v15 }
  0x19   : > { %v233_v22 = vadd.f32 %v232_v14, %v231_v19 }
  0x1a   : > { %v218_v23 = vmul.f32 %v217_v20, %v217_v20  ;;  %v248_v24 = vadd.f32 %v247_v18, %v246_v21 }
  0x1b   : > { %v234_v25 = vmul.f32 %v233_v22, %v233_v22 }
  0x1c   : > { %v221_v26 = vsel %vm220_vm0, %v218_v23, 0.0  ;;  %v249_v27 = vmul.f32 %v248_v24, %v248_v24 }
  0x1d   : > { %v222_v28 = vrot.slane %v221_v26, 4  ;;  %v236_v29 = vsel %vm220_vm0, %v234_v25, 0.0 }
  0x1e   : > { %v237_v30 = vrot.slane %v236_v29, 4  ;;  %v251_v31 = vsel %vm220_vm0, %v249_v27, 0.0 }
  0x1f   : > { %v223_v32 = vadd.f32 %v222_v28, %v221_v26  ;;  %v252_v33 = vrot.slane %v251_v31, 4 }
  0x20   : > { %v238_v34 = vadd.f32 %v237_v30, %v236_v29 }
  0x21   : > { %v224_v35 = vrot.slane %v223_v32, 2  ;;  %v253_v36 = vadd.f32 %v252_v33, %v251_v31 }
  0x22   : > { %v239_v37 = vrot.slane %v238_v34, 2 }
  0x23   : > { %v225_v38 = vadd.f32 %v224_v35, %v223_v32  ;;  %v254_v39 = vrot.slane %v253_v36, 2 }
  0x24   : > { %v240_v40 = vadd.f32 %v239_v37, %v238_v34 }
  0x25   : > { %v226_v41 = vrot.slane %v225_v38, 1  ;;  %v255_v42 = vadd.f32 %v254_v39, %v253_v36 }
  0x26   : > { %v241_v43 = vrot.slane %v240_v40, 1 }
  0x27   : > { %v227_v44 = vadd.f32 %v226_v41, %v225_v38  ;;  %v256_v45 = vrot.slane %v255_v42, 1 }
  0x28   : > { %v242_v46 = vadd.f32 %v241_v43, %v240_v40 }
  0x29   : > { %228 = vst [vmem:[%s203_s23] sm:$0x1] %v227_v44  ;;  %v257_v47 = vadd.f32 %v256_v45, %v255_v42 }
  0x2a   : > { %243 = vst [vmem:[%s203_s23 + $0x1] sm:$0x1] %v242_v46 }
  0x2b   : > { %258 = vst [vmem:[%s203_s23 + $0x2] sm:$0x1] %v257_v47 }
  0x2c PF: > { %s12_s11 = sadd.s32 1, %s411_s11   ;;  %s471_s9 = smov %s407_s10 }
  0x2d   : > { %p9_p5 = scmp.ge.s32.totalorder %s12_s11, 4   ;;  %s472_s10 = smov %s474_s12 }
  0x2f   :  { %11 = sbr.rel (!%p9_p5) target bundleno = 2 (0x2), region = 61 }

</bundles_post_ra>
